<compile_context>
chip_gen: v5e
topology: v5e:2x2
jax: 0.10.0
libtpu: 0.0.40
codegen_flags: <defaults>
</compile_context>

<pallas_src>
import jax
import jax.numpy as jnp
from jax.experimental import pallas as pl
from jax.experimental.pallas import tpu as pltpu

_LANES = 128
_SUBLANES = 8


def _cdiv(a, b):
    return -(-a // b)


def _make_l1_kernel(rows_per_block, tiles_per_core, total_rows, need_mask):
    """Build the per-block |SR - HR| partial-sum kernel (closes over statics)."""
    groups = rows_per_block // _SUBLANES

    def kernel(sr_ref, hr_ref, out_ref):
        # sr_ref / hr_ref : (rows_per_block, 128) block of the flattened inputs.
        # out_ref         : (8, 128) f32 block, resident across the reduction
        #                   (last) grid axis -> vector accumulator.
        c = pl.program_id(0)
        i = pl.program_id(1)

        @pl.when(i == 0)
        def _init():
            out_ref[...] = jnp.zeros_like(out_ref)

        diff = jnp.abs(
            sr_ref[...].astype(jnp.float32) - hr_ref[...].astype(jnp.float32)
        )
        if need_mask:
            # Last block may extend past the array; its OOB rows hold garbage
            # in VMEM -> zero them (select does not propagate NaN/Inf).
            g = c * tiles_per_core + i
            row0 = g * rows_per_block
            row_idx = row0 + jax.lax.broadcasted_iota(
                jnp.int32, (rows_per_block, _LANES), 0
            )
            diff = jnp.where(row_idx < total_rows, diff, 0.0)

        # Regroup (rows, 128) -> (rows/8, 8, 128): layout-free, then reduce the
        # leading axis only (pure VPU adds, no cross-lane/XLU work in the loop).
        out_ref[...] += jnp.sum(diff.reshape(groups, _SUBLANES, _LANES), axis=0)

    return kernel


def l1_loss_pallas(sr, hr, *, target_block_bytes=4 << 20, core_split=1):
    """Mean absolute error between sr and hr (same semantics as nn.L1Loss()).

    target_block_bytes: per-input VMEM block size per grid step (~4 MiB keeps
        2 inputs x 2 pipeline buffers = 16 MiB, safe on every TPU generation).
    core_split: set to 2 on v7x to shard the stream across its two TensorCores
        (leading grid axis becomes CORE_PARALLEL); leave 1 on v5e/v6e.
    """
    assert sr.shape == hr.shape, "SR and HR must have identical shapes"
    n_elem = sr.size

    sr_flat = sr.reshape(-1)
    hr_flat = hr.reshape(-1)

    total_rows = n_elem // _LANES  # complete 128-lane rows
    total_kernel = jnp.float32(0.0)
    covered = 0  # elements handled by the Pallas kernel

    if total_rows >= _SUBLANES:
        itemsize = max(jnp.dtype(sr.dtype).itemsize, jnp.dtype(hr.dtype).itemsize)

        # Rows per block: multiple of 8, sized to ~target_block_bytes per input
        # in the *native* dtype (bf16 gets 2x the rows of f32 for free).
        rows_per_block = (target_block_bytes // (_LANES * itemsize)) // _SUBLANES
        rows_per_block = max(_SUBLANES, rows_per_block * _SUBLANES)
        rows_per_block = min(rows_per_block, (total_rows // _SUBLANES) * _SUBLANES)

        n_blocks = _cdiv(total_rows, rows_per_block)  # cdiv: keep every full row
        split = core_split if (core_split > 1 and n_blocks % core_split == 0) else 1
        tiles_per_core = n_blocks // split
        need_mask = (total_rows % rows_per_block) != 0

        covered = total_rows * _LANES
        # Free reshape whenever n_elem % 128 == 0 (the common case); only a
        # sub-128 ragged tail forces a prefix copy.
        sr_pref = sr_flat if covered == n_elem else sr_flat[:covered]
        hr_pref = hr_flat if covered == n_elem else hr_flat[:covered]
        sr2 = sr_pref.reshape(total_rows, _LANES)
        hr2 = hr_pref.reshape(total_rows, _LANES)

        def in_map(c, i):
            return (c * tiles_per_core + i, 0)

        block_bytes = rows_per_block * _LANES * itemsize
        # 2 inputs x 2 pipeline buffers + output/scratch slack; clamp to stay
        # above v5e's 16 MiB scoped default and below v7x's 64 MiB physical.
        vmem_limit = int(min(max(4 * block_bytes + (4 << 20), 16 << 20), 56 << 20))

        if split > 1:
            dim_sem = (pltpu.CORE_PARALLEL, pltpu.ARBITRARY)
        else:
            dim_sem = ("arbitrary", "arbitrary")

        kernel = _make_l1_kernel(rows_per_block, tiles_per_core, total_rows, need_mask)

        partials = pl.pallas_call(
            kernel,
            out_shape=jax.ShapeDtypeStruct((split * _SUBLANES, _LANES), jnp.float32),
            grid_spec=pltpu.PrefetchScalarGridSpec(
                num_scalar_prefetch=0,
                grid=(split, tiles_per_core),
                in_specs=[
                    pl.BlockSpec((rows_per_block, _LANES), in_map),
                    pl.BlockSpec((rows_per_block, _LANES), in_map),
                ],
                out_specs=pl.BlockSpec((_SUBLANES, _LANES), lambda c, i: (c, 0)),
            ),
            compiler_params=pltpu.CompilerParams(
                dimension_semantics=dim_sem,
                vmem_limit_bytes=vmem_limit,
            ),
            cost_estimate=pl.CostEstimate(
                flops=3 * covered,
                transcendentals=0,
                bytes_accessed=2 * covered * itemsize
                + split * _SUBLANES * _LANES * 4,
            ),
        )(sr2, hr2)

        # Single cross-lane reduce over the tiny (split*8, 128) partials.
        total_kernel = jnp.sum(partials)

    # Sub-128-element remainder (or the degenerate n_elem < 1024 case): cheap
    # plain-JAX path.
    total_tail = jnp.float32(0.0)
    if covered < n_elem:
        sr_t = sr_flat[covered:].astype(jnp.float32)
        hr_t = hr_flat[covered:].astype(jnp.float32)
        total_tail = jnp.sum(jnp.abs(sr_t - hr_t))

    return (total_kernel + total_tail) / jnp.float32(n_elem)


if __name__ == "__main__":
    key = jax.random.PRNGKey(0)
    k1, k2, k3, k4 = jax.random.split(key, 4)

    # Small SR / HR tensors in NCHW, matching get_loss.forward(SR, HR).
    sr = jax.random.normal(k1, (2, 4, 16, 16), dtype=jnp.float32)
    hr = jax.random.normal(k2, (2, 4, 16, 16), dtype=jnp.float32)

    loss = jax.block_until_ready(l1_loss_pallas(sr, hr))
    ref = jnp.mean(jnp.abs(sr - hr))
    assert jnp.allclose(loss, ref, rtol=1e-5, atol=1e-6), (loss, ref)

    # Ragged shape: exercises the masked boundary block + sub-128 JAX tail.
    sr_r = jax.random.normal(k3, (2, 3, 15, 13), dtype=jnp.float32)
    hr_r = jax.random.normal(k4, (2, 3, 15, 13), dtype=jnp.float32)
    loss_r = jax.block_until_ready(l1_loss_pallas(sr_r, hr_r))
    ref_r = jnp.mean(jnp.abs(sr_r - hr_r))
    assert jnp.allclose(loss_r, ref_r, rtol=1e-5, atol=1e-6), (loss_r, ref_r)

    print("KERNEL_OK")
</pallas_src>

<mosaic_0001>
module attributes {stable_mosaic.version = 11 : i64} {
  func.func @kernel(%arg0: i32, %arg1: i32, %arg2: memref<16x128xf32, #tpu.memory_space<vmem>>, %arg3: memref<16x128xf32, #tpu.memory_space<vmem>>, %arg4: memref<8x128xf32, #tpu.memory_space<vmem>>) attributes {dimension_semantics = [#tpu.dimension_semantics<arbitrary>, #tpu.dimension_semantics<arbitrary>], iteration_bounds = array<i64: 1, 1>, scalar_prefetch = 0 : i64, scratch_operands = 0 : i64, tpu.core_type = #tpu.core_type<tc>, window_params = [{transform_indices = @transform_0, window_bounds = array<i64: 16, 128>}, {transform_indices = @transform_1, window_bounds = array<i64: 16, 128>}, {transform_indices = @transform_2, window_bounds = array<i64: 8, 128>}]} {
    %c0_i32 = arith.constant 0 : i32
    %0 = arith.cmpi eq, %arg1, %c0_i32 : i32
    %1 = arith.extui %0 : i1 to i32
    %c0_i32_0 = arith.constant 0 : i32
    %2 = arith.cmpi ne, %1, %c0_i32_0 : i32
    scf.if %2 {
      %cst_8 = arith.constant 0.000000e+00 : f32
      %12 = vector.broadcast %cst_8 : f32 to vector<8x128xf32>
      %c0_9 = arith.constant 0 : index
      %c0_10 = arith.constant 0 : index
      %13 = vector.load %arg4[%c0_9, %c0_10] : memref<8x128xf32, #tpu.memory_space<vmem>>, vector<8x128xf32>
      tpu.vector_store %arg4[%c0_9, %c0_10], %12 {strides = array<i32>} : memref<8x128xf32, #tpu.memory_space<vmem>>, vector<8x128xf32>,
    } else {
    }
    %c0 = arith.constant 0 : index
    %c0_1 = arith.constant 0 : index
    %3 = vector.load %arg2[%c0, %c0_1] : memref<16x128xf32, #tpu.memory_space<vmem>>, vector<16x128xf32>
    %c0_2 = arith.constant 0 : index
    %c0_3 = arith.constant 0 : index
    %4 = vector.load %arg3[%c0_2, %c0_3] : memref<16x128xf32, #tpu.memory_space<vmem>>, vector<16x128xf32>
    %5 = arith.subf %3, %4 : vector<16x128xf32>
    %6 = math.absf %5 : vector<16x128xf32>
    %c0_4 = arith.constant 0 : index
    %c0_5 = arith.constant 0 : index
    %7 = vector.load %arg4[%c0_4, %c0_5] : memref<8x128xf32, #tpu.memory_space<vmem>>, vector<8x128xf32>
    %8 = vector.shape_cast %6 : vector<16x128xf32> to vector<2x8x128xf32>
    %cst = arith.constant dense<0.000000e+00> : vector<8x128xf32>
    %9 = vector.multi_reduction <add>, %8, %cst [0] : vector<2x8x128xf32> to vector<8x128xf32>
    %10 = arith.addf %7, %9 : vector<8x128xf32>
    %c0_6 = arith.constant 0 : index
    %c0_7 = arith.constant 0 : index
    %11 = vector.load %arg4[%c0_6, %c0_7] : memref<8x128xf32, #tpu.memory_space<vmem>>, vector<8x128xf32>
    tpu.vector_store %arg4[%c0_6, %c0_7], %10 {strides = array<i32>} : memref<8x128xf32, #tpu.memory_space<vmem>>, vector<8x128xf32>,
    return
  }
  func.func @transform_0(%arg0: i32, %arg1: i32) -> (i32, i32) {
    %c1_i32 = arith.constant 1 : i32
    %0 = arith.muli %arg0, %c1_i32 : i32
    %1 = arith.addi %0, %arg1 : i32
    %c0_i32 = arith.constant 0 : i32
    %c0_i32_0 = arith.constant 0 : i32
    return %1, %c0_i32 : i32, i32
  }
  func.func @transform_1(%arg0: i32, %arg1: i32) -> (i32, i32) {
    %c1_i32 = arith.constant 1 : i32
    %0 = arith.muli %arg0, %c1_i32 : i32
    %1 = arith.addi %0, %arg1 : i32
    %c0_i32 = arith.constant 0 : i32
    %c0_i32_0 = arith.constant 0 : i32
    return %1, %c0_i32 : i32, i32
  }
  func.func @transform_2(%arg0: i32, %arg1: i32) -> (i32, i32) {
    %c0_i32 = arith.constant 0 : i32
    %c0_i32_0 = arith.constant 0 : i32
    return %arg0, %c0_i32 : i32, i32
  }
}

</mosaic_0001>

<bundles_post_ra>
// kernel: tpu_custom_call.1
= control target key start
LH: loop header
LB: loop body
LE: loop exit
PB: predicated region body
PF: predicated region fallthrough
CT: control target
= control target key end

     0   :  { %7 = vsyncpa [#allocation3], 0  ;;  %s204_s0 = inlined_call_operand.hbm [shape: f32[16,128], index: 0, kind: input, shape index: {}]   ;;  %s205_s1 = inlined_call_operand.hbm [shape: f32[16,128], index: 1, kind: input, shape index: {}]   ;;  %s206_s2 = inlined_call_operand.hbm [shape: f32[8,128], index: 2, kind: output, shape index: {}]  }
   0x1   :  { %8 = vsyncpa [#allocation6], 0 }
   0x2   :  { %9 = vsyncpa [#allocation4], 0  ;;  %s18_s11 = sshll.u32 %s204_s0, 4  ;;  %s175_s12 = smov [#allocation2]   ;;  %s19_s11 = int_to_ptr.hbm [resolvable:$true] %s18_s11 }
   0x3   :  { %s20_s13 = sshll.u32 %s175_s12, 4  ;;  %s35_s16 = sshll.u32 %s205_s1, 4  ;;  %s21_s13 = int_to_ptr.vmem [resolvable:$true] %s20_s13  ;;  %s36_s16 = int_to_ptr.hbm [resolvable:$true] %s35_s16 }
   0x4   :  { %s176_s17 = smov 128   ;;  %s177_s18 = smov 8  }
   0x5   :  { %26 = dma.hbm_to_vmem [thread:$0]  %s19_s11, 256, %s21_s13, [#allocation3], %s176_s17, %s176_s17, %s177_s18  }
   0x6   :  { %s178_s19 = smov [#allocation5]  }
   0x7   :  { %s37_s20 = sshll.u32 %s178_s19, 4  ;;  %s38_s20 = int_to_ptr.vmem [resolvable:$true] %s37_s20 }
   0x8   :  { %43 = dma.hbm_to_vmem [thread:$0]  %s36_s16, 256, %s38_s20, [#allocation6], %s176_s17, %s176_s17, %s177_s18  }
   0x9   :  { %169 = dma.done.wait [#allocation3], 256  }
   0xa   :  { %170 = vsyncadd [#allocation3], 4294967040 }
   0xb   :  { %171 = dma.done.wait [#allocation6], 256  }
   0xc   :  { %172 = vsyncadd [#allocation6], 4294967040  ;;  %v61_v0 = vld [vmem:[#allocation2] sm:$0xff]  ;;  %v62_v1 = vld [vmem:[#allocation2 + $0x8] sm:$0xff]  ;;  %s179_s0 = smov [#allocation7]   ;;  %s80_s23 = sshll.u32 %s206_s2, 4  ;;  %s81_s23 = int_to_ptr.hbm [resolvable:$true] %s80_s23 }
   0xd   :  { %v63_v2 = vld [vmem:[#allocation5] sm:$0xff]  ;;  %v64_v3 = vld [vmem:[#allocation5 + $0x8] sm:$0xff]  ;;  %s78_s1 = sshll.u32 %s179_s0, 4  ;;  %s79_s1 = int_to_ptr.vmem [resolvable:$true] %s78_s1 }
   0xe   :  { %v65_v4 = vsub.f32 %v61_v0, %v63_v2  ;;  %v66_v5 = vsub.f32 %v62_v1, %v64_v3 }
  0x10   :  { %v67_v6 = vand.u32 2147483647, %v65_v4  ;;  %v68_v7 = vand.u32 2147483647, %v66_v5 }
  0x12   :  { %v70_v8 = vadd.f32 %v68_v7, %v67_v6 }
  0x14   :  { %72 = vst [vmem:[#allocation7] sm:$0xff] %v70_v8 }
  0x15   :  { %83 = dma.vmem_to_hbm [thread:$0]  %s79_s1, 128, %s81_s23, [#allocation4]  }
  0x16   :  { %173 = dma.done.wait [#allocation4], 128  }
  0x17   :  { %174 = vsyncadd [#allocation4], 4294967168 }
  0x18   :  { %88 = vsyncpa [#allocation3], 1 }
  0x19   :  { %89 = vsyncpa [#allocation6], 1 }
  0x1a   :  { %90 = vsyncpa [#allocation4], 1 }

</bundles_post_ra>
